<compile_context>
chip_gen: v7x
topology: tpu7x:2x2x1
jax: 0.10.0
libtpu: 0.0.40
codegen_flags: <defaults>
</compile_context>

<pallas_src>
import jax
import jax.numpy as jnp
from jax.experimental import pallas as pl
from jax.experimental.pallas import tpu as pltpu


def _round_up(n, m):
    return ((n + m - 1) // m) * m


def fused_mlp_kernel(x_ref, w_ref, b_ref, o_ref):
    # Single fused affine layer: (TB, 8) @ (8, 128) + (1, 128) on the MXU,
    # then store only the valid num_class lanes to the narrow HBM output.
    y = jnp.dot(x_ref[...], w_ref[...], preferred_element_type=jnp.float32)
    n_valid = o_ref.shape[-1]
    o_ref[...] = (y + b_ref[...])[:, :n_valid].astype(o_ref.dtype)


def prepare_fused_params(w1_t, b1, w2_t, b2):
    """Fold fc2(fc1(.)) into one affine map and lane-pad the small operands.

    Runs once per parameter set (hoisted out of the forward path).
    Weights are stored pre-transposed as [in_features, out_features].
    """
    w_fused = w1_t @ w2_t            # (8, num_class)
    b_fused = b1 @ w2_t + b2         # (1, num_class)
    num_class = int(w_fused.shape[1])
    k = int(w_fused.shape[0])
    n_pad = _round_up(max(num_class, 1), 128)   # 128-lane MXU operand shape
    w_p = jnp.zeros((k, n_pad), w_fused.dtype).at[:, :num_class].set(w_fused)
    b_p = jnp.zeros((1, n_pad), b_fused.dtype).at[:, :num_class].set(b_fused)
    return w_p, b_p, num_class


def net_forward(x, w_p, b_p, num_class, *, max_block_b=4096):
    """x: (B, 8) float32 -> (B, num_class) float32."""
    B, K = x.shape
    n_pad = w_p.shape[1]

    # Batch tile: multiple of 8 sublanes, capped at max_block_b rows.
    tb = min(max_block_b, _round_up(B, 8))
    if B >= 16:
        # Keep >= 2 grid steps so the "parallel" axis can use both v7x TCs.
        tb = min(tb, _round_up((B + 1) // 2, 8))
    grid = (pl.cdiv(B, tb),)   # trailing partial block handled by Pallas

    return pl.pallas_call(
        fused_mlp_kernel,
        out_shape=jax.ShapeDtypeStruct((B, num_class), jnp.float32),
        grid=grid,
        in_specs=[
            # x: tiled over the batch grid axis
            pl.BlockSpec((tb, K), lambda i: (i, 0)),
            # fused weight / bias: grid-invariant -> VMEM-resident, no per-step DMA
            pl.BlockSpec((K, n_pad), lambda i: (0, 0)),
            pl.BlockSpec((1, n_pad), lambda i: (0, 0)),
        ],
        # Narrow (lane-unpadded) output block; last dim equals full array dim.
        out_specs=pl.BlockSpec((tb, num_class), lambda i: (i, 0)),
        compiler_params=pltpu.CompilerParams(
            dimension_semantics=("parallel",),
            vmem_limit_bytes=32 * 1024 * 1024,
        ),
    )(x, w_p, b_p)


def init_params(key, num_class=10):
    """Deterministic parameter init (uniform, PyTorch-Linear-style bounds)."""
    k1, k2, k3, k4 = jax.random.split(key, 4)
    in1, out1 = 8, 4
    in2, out2 = 4, num_class
    bound1 = 1.0 / jnp.sqrt(in1)
    bound2 = 1.0 / jnp.sqrt(in2)
    # stored pre-transposed: [in_features, out_features]
    w1_t = jax.random.uniform(k1, (in1, out1), jnp.float32, -bound1, bound1)
    b1 = jax.random.uniform(k2, (1, out1), jnp.float32, -bound1, bound1)
    w2_t = jax.random.uniform(k3, (in2, out2), jnp.float32, -bound2, bound2)
    b2 = jax.random.uniform(k4, (1, out2), jnp.float32, -bound2, bound2)
    return w1_t, b1, w2_t, b2


if __name__ == "__main__":
    key = jax.random.PRNGKey(0)
    k_x, k_x2, k_p = jax.random.split(key, 3)

    w1_t, b1, w2_t, b2 = init_params(k_p, num_class=10)
    # Hoisted: fusion + lane padding done once per parameter set.
    w_p, b_p, num_class = prepare_fused_params(w1_t, b1, w2_t, b2)

    # small batch, exact tile fit
    B = 8
    x = jax.random.normal(k_x, (B, 8), jnp.float32)
    out = jax.block_until_ready(net_forward(x, w_p, b_p, num_class))
    ref = (x @ w1_t + b1) @ w2_t + b2
    assert out.shape == (B, 10)
    assert jnp.allclose(out, ref, atol=1e-5, rtol=1e-4)

    # non-multiple-of-8 batch: exercises the partial trailing block path
    # (no host-side pad of x, no [:B] output slice).
    B2 = 13
    x2 = jax.random.normal(k_x2, (B2, 8), jnp.float32)
    out2 = jax.block_until_ready(net_forward(x2, w_p, b_p, num_class))
    ref2 = (x2 @ w1_t + b1) @ w2_t + b2
    assert out2.shape == (B2, 10)
    assert jnp.allclose(out2, ref2, atol=1e-5, rtol=1e-4)

    print("KERNEL_OK")
</pallas_src>

<mosaic_0001>
module attributes {stable_mosaic.version = 11 : i64} {
  func.func @fused_mlp_kernel(%arg0: i32, %arg1: memref<8x8xf32, #tpu.memory_space<vmem>>, %arg2: memref<8x128xf32, #tpu.memory_space<vmem>>, %arg3: memref<1x128xf32, #tpu.memory_space<vmem>>, %arg4: memref<8x10xf32, #tpu.memory_space<vmem>>) attributes {dimension_semantics = [#tpu.dimension_semantics<parallel>], iteration_bounds = array<i64: 1>, scalar_prefetch = 0 : i64, scratch_operands = 0 : i64, tpu.core_type = #tpu.core_type<tc>, window_params = [{transform_indices = @transform_0, window_bounds = array<i64: 8, 8>}, {pipeline_mode = #tpu.pipeline_mode<synchronous>, transform_indices = @transform_1, window_bounds = array<i64: 8, 128>}, {pipeline_mode = #tpu.pipeline_mode<synchronous>, transform_indices = @transform_2, window_bounds = array<i64: 1, 128>}, {transform_indices = @transform_3, window_bounds = array<i64: 8, 10>}]} {
    %c0 = arith.constant 0 : index
    %c0_0 = arith.constant 0 : index
    %0 = vector.load %arg1[%c0, %c0_0] : memref<8x8xf32, #tpu.memory_space<vmem>>, vector<8x8xf32>
    %c0_1 = arith.constant 0 : index
    %c0_2 = arith.constant 0 : index
    %1 = vector.load %arg2[%c0_1, %c0_2] : memref<8x128xf32, #tpu.memory_space<vmem>>, vector<8x128xf32>
    %cst = arith.constant dense<0.000000e+00> : vector<8x128xf32>
    %2 = tpu.matmul %0, %1, %cst {dimension_numbers = #tpu.dot_dimension_numbers<[1], [0], [0], [1], [0, 0, 1, 1], [], []>} : vector<8x8xf32>, vector<8x128xf32>, vector<8x128xf32> -> vector<8x128xf32>
    %c0_3 = arith.constant 0 : index
    %c0_4 = arith.constant 0 : index
    %3 = vector.load %arg3[%c0_3, %c0_4] : memref<1x128xf32, #tpu.memory_space<vmem>>, vector<1x128xf32>
    %4 = vector.broadcast %3 : vector<1x128xf32> to vector<8x128xf32>
    %5 = arith.addf %2, %4 : vector<8x128xf32>
    %6 = vector.extract_strided_slice %5 {offsets = [0, 0], sizes = [8, 10], strides = [1, 1]} : vector<8x128xf32> to vector<8x10xf32>
    %c0_5 = arith.constant 0 : index
    %c0_6 = arith.constant 0 : index
    %7 = vector.load %arg4[%c0_5, %c0_6] : memref<8x10xf32, #tpu.memory_space<vmem>>, vector<8x10xf32>
    tpu.vector_store %arg4[%c0_5, %c0_6], %6 {strides = array<i32>} : memref<8x10xf32, #tpu.memory_space<vmem>>, vector<8x10xf32>,
    return
  }
  func.func @transform_0(%arg0: i32) -> (i32, i32) {
    %c0_i32 = arith.constant 0 : i32
    %c0_i32_0 = arith.constant 0 : i32
    return %arg0, %c0_i32 : i32, i32
  }
  func.func @transform_1(%arg0: i32) -> (i32, i32) {
    %c0_i32 = arith.constant 0 : i32
    %c0_i32_0 = arith.constant 0 : i32
    %c0_i32_1 = arith.constant 0 : i32
    return %c0_i32, %c0_i32_0 : i32, i32
  }
  func.func @transform_2(%arg0: i32) -> (i32, i32) {
    %c0_i32 = arith.constant 0 : i32
    %c0_i32_0 = arith.constant 0 : i32
    %c0_i32_1 = arith.constant 0 : i32
    return %c0_i32, %c0_i32_0 : i32, i32
  }
  func.func @transform_3(%arg0: i32) -> (i32, i32) {
    %c0_i32 = arith.constant 0 : i32
    %c0_i32_0 = arith.constant 0 : i32
    return %arg0, %c0_i32 : i32, i32
  }
}

</mosaic_0001>

<bundles_post_ra>
// kernel: tpu_custom_call.1
= control target key start
LH: loop header
LB: loop body
LE: loop exit
PB: predicated region body
PF: predicated region fallthrough
CT: control target
= control target key end

     0   :  { %8 = vsyncpa [#allocation3], 0  ;;  %s290_s0 = inlined_call_operand.hbm [shape: f32[8,8], index: 0, kind: input, shape index: {}]   ;;  %s291_s1 = inlined_call_operand.hbm [shape: f32[8,128], index: 1, kind: input, shape index: {}]   ;;  %s292_s2 = inlined_call_operand.vmem [shape: f32[1,128], index: 2, kind: input, shape index: {}]   ;;  %s293_s3 = inlined_call_operand.hbm [shape: f32[8,10], index: 3, kind: output, shape index: {}]  }
   0x1   :  { %9 = vsyncpa [#allocation6], 0 }
   0x2   :  { %10 = vsyncpa [#allocation4], 0  ;;  %s226_s12 = smov [#allocation2]   ;;  %s227_s14 = smov [#allocation5]  }
   0x3   :  { %s17_s13 = sshll.u32 %s226_s12, 4  ;;  %s27_s15 = sshll.u32 %s227_s14, 4  ;;  %s18_s13 = int_to_ptr.vmem [resolvable:$true] %s17_s13  ;;  %s28_s15 = int_to_ptr.vmem [resolvable:$true] %s27_s15 }
   0x4   :  { %s154_s18 = scalar_lea.hbm %s290_s0, 128 }
   0x5   :  { %p155_p0 = scmp.ne.s32.totalorder %s290_s0, %s154_s18  ;;  %p158_p1 = scmp.lt.u32.totalorder %s154_s18, %s290_s0 }
   0x7   :  { %p160_p2 = pnand %p158_p1, %p155_p0 }
   0x9   :  { %163 = shalt.err (!%p160_p2)
}
   0xa   :  { %s164_s23 = scalar_lea.vmem %s18_s13, 128  ;;  %p169_p4 = scmp.lt.s32.totalorder %s18_s13, %s18_s13 }
   0xb   :  { %p165_p3 = scmp.ne.s32.totalorder %s18_s13, %s164_s23  ;;  %p170_p5 = scmp.lt.s32.totalorder %s164_s23, %s164_s23 }
   0xd   :  { %p171_p6 = por %p170_p5, %p169_p4 }
   0xf   :  { %p172_p7 = pnand %p171_p6, %p165_p3 }
  0x11   :  { %175 = shalt.err (!%p172_p7)
}
  0x12   :  { %20 = dma.hbm_to_vmem [thread:$0]  %s290_s0, 128, %s18_s13, [#allocation3]  }
  0x13   :  { %s176_s28 = scalar_lea.hbm %s291_s1, 128 }
  0x14   :  { %p177_p8 = scmp.ne.s32.totalorder %s291_s1, %s176_s28  ;;  %p180_p9 = scmp.lt.u32.totalorder %s176_s28, %s291_s1 }
  0x16   :  { %p182_p10 = pnand %p180_p9, %p177_p8 }
  0x18   :  { %185 = shalt.err (!%p182_p10)
}
  0x19   :  { %s186_s6 = scalar_lea.vmem %s28_s15, 128  ;;  %p191_p12 = scmp.lt.s32.totalorder %s28_s15, %s28_s15 }
  0x1a   :  { %p187_p11 = scmp.ne.s32.totalorder %s28_s15, %s186_s6  ;;  %p192_p13 = scmp.lt.s32.totalorder %s186_s6, %s186_s6 }
  0x1c   :  { %p193_p0 = por %p192_p13, %p191_p12 }
  0x1e   :  { %p194_p1 = pnand %p193_p0, %p187_p11 }
  0x20   :  { %197 = shalt.err (!%p194_p1)
}
  0x21   :  { %30 = dma.hbm_to_vmem [thread:$0]  %s291_s1, 128, %s28_s15, [#allocation6]  }
  0x22   :  { %220 = dma.done.wait [#allocation3], 128  }
  0x23   :  { %221 = vsyncadd [#allocation3], 4294967168 }
  0x24   :  { %222 = dma.done.wait [#allocation6], 128  }
  0x25   :  { %223 = vsyncadd [#allocation6], 4294967168  ;;  %v228_v0 = vmov 0.0   ;;  %vm229_vm0 = vmmov 0   ;;  %vm48_vm1 = vcmask 64512   ;;  %v40_v1 = vld [vmem:[#allocation5] sm:$0xff] }
  0x26   :  { %144 = vmatprep.subr.mxu0 %v228_v0  ;;  %146 = vmatprep.mubr.msk.f32.mxu0 %vm229_vm0, %v228_v0  ;;  %v39_v2 = vld [vmem:[#allocation2] sm:$0xff]  ;;  %s230_s10 = smov [#allocation7]   ;;  %vm122_vm2 = vcmask 80896  }
  0x27   :  { %145 = vmatpush3.msra.mxu0 %v40_v1  ;;  %v140_v3 = vld [vmem:[%s292_s2] ss:$0 sm:$0xff]  ;;  %s130_s11 = sshll.u32 %s230_s10, 4  ;;  %s131_s11 = int_to_ptr.vmem [resolvable:$true] %s130_s11 }
  0x28   :  { %147 = vmatmul.mubr.msk.f32.vlgmr.msra.gmra.mrb[0].mxu0 %vm48_vm1, %v39_v2  ;;  %s198_s1 = scalar_lea.vmem %s131_s11, 128  ;;  %p203_p3 = scmp.lt.s32.totalorder %s131_s11, %s131_s11 }
  0x29   :  { %p199_p2 = scmp.ne.s32.totalorder %s131_s11, %s198_s1  ;;  %p204_p4 = scmp.lt.s32.totalorder %s198_s1, %s198_s1 }
  0x2b   :  { %p205_p5 = por %p204_p4, %p203_p3 }
  0x2d   :  { %p206_p6 = pnand %p205_p5, %p199_p2 }
  0xfb   :  { %v118_v4 = vpop.f32.mrb[0].mxu0 }
  0xfc   :  { %v119_v5 = vadd.f32 %v140_v3, %v118_v4  ;;  %v148_v6 = vpop.f32.mrb[1].mxu0 }
  0xfe   :  { %123 = vst.msk [vmem:[#allocation7] sm:$0xff] %vm122_vm2, %v119_v5 }
  0xff   :  { %209 = shalt.err (!%p206_p6)
}
 0x100   :  { %s210_s14 = scalar_lea.hbm %s293_s3, 128 }
 0x101   :  { %p211_p7 = scmp.ne.s32.totalorder %s293_s3, %s210_s14  ;;  %p214_p8 = scmp.lt.u32.totalorder %s210_s14, %s293_s3 }
 0x103   :  { %p216_p9 = pnand %p214_p8, %p211_p7 }
 0x105   :  { %219 = shalt.err (!%p216_p9)
}
 0x106   :  { %133 = dma.vmem_to_hbm [thread:$0]  %s131_s11, 128, %s293_s3, [#allocation4]  }
 0x107   :  { %224 = dma.done.wait [#allocation4], 128  }
 0x108   :  { %225 = vsyncadd [#allocation4], 4294967168 }
 0x109   :  { %137 = vsyncpa [#allocation3], 1 }
 0x10a   :  { %138 = vsyncpa [#allocation6], 1 }
 0x10b   :  { %139 = vsyncpa [#allocation4], 1 }

</bundles_post_ra>
